<compile_context>
chip_gen: v7x
topology: tpu7x:2x2x1
jax: 0.10.0
libtpu: 0.0.40
codegen_flags: <defaults>
</compile_context>

<pallas_src>
import functools
import math

import jax
import jax.numpy as jnp
from jax.experimental import pallas as pl
from jax.experimental.pallas import tpu as pltpu


def _round_up(x: int, m: int) -> int:
    return ((x + m - 1) // m) * m


def _default_vmem_limit_bytes() -> int:
    # ~80% of this generation's VMEM (v5e/v6e: 128 MiB, v7x: 64 MiB/TC), capped.
    try:
        cap = int(pltpu.get_tpu_info().vmem_capacity_bytes)
    except Exception:
        cap = 64 << 20
    return max(32 << 20, min(int(cap * 0.8), 100 << 20))


def _decoder_kernel(emb_ref, w1_ref, b1_ref, w2_ref, b2_ref, fp_ref, out_ref,
                    *, approx_epilogue: bool):
    mxu_dt = w1_ref.dtype
    # Tiny 2-layer MLP on this batch tile (recomputed per grid step; negligible
    # vs. the (TB, H) x (H, 512) fp matmul which dominates when N >> E, H).
    h1 = jnp.dot(emb_ref[...], w1_ref[...], preferred_element_type=jnp.float32)
    h1 = jnp.maximum(h1 + b1_ref[...], 0.0)
    h2 = jnp.dot(h1.astype(mxu_dt), w2_ref[...], preferred_element_type=jnp.float32)
    h2 = jnp.maximum(h2 + b2_ref[...], 0.0)

    # Dominant matmul: (TB, H) x (H, TN=512), f32 accumulation.
    logits = jnp.dot(h2.astype(mxu_dt), fp_ref[...],
                     preferred_element_type=jnp.float32)
    if approx_epilogue:
        # exp on the EUP + approx reciprocal (also EUP) -> no VPU divide.
        out = pl.reciprocal(1.0 + jnp.exp(-logits), approx=True)
    else:
        out = jax.nn.sigmoid(logits)
    out_ref[...] = out.astype(out_ref.dtype)


def decoder_forward(embedding, params, num_nodes, *, approx_epilogue=None,
                    interpret=False):
    """Pallas forward pass.

    embedding:  [B, E]
    params:     w1 [E, 2H], w2 [2H, H], final_predict [H, MN_pad] stored in the
                MXU dtype (f32 or bf16, chosen once at init / cast_params_for_mxu);
                b1 [1, 2H], b2 [1, H] stored in f32 (added after f32 accumulation).
                final_predict's last dim is zero-padded to a multiple of 512.
    num_nodes:  static int (next_snapshot.num_nodes), <= max_num_nodes.
    """
    w1, b1 = params["w1"], params["b1"]
    w2, b2 = params["w2"], params["b2"]
    fp = params["final_predict"]

    mxu_dtype = w1.dtype
    if approx_epilogue is None:
        approx_epilogue = (mxu_dtype == jnp.bfloat16)

    out_dtype = embedding.dtype
    emb = embedding.astype(mxu_dtype)           # only the small activation is cast

    B, E = embedding.shape
    H2 = w1.shape[1]
    H = w2.shape[1]
    MN_pad = fp.shape[1]
    assert MN_pad % 512 == 0, "final_predict last dim must be padded to x512 at init"
    assert 0 < num_nodes <= MN_pad

    TN = 512                                    # never degrade the fp tile width
    N_pad = min(_round_up(num_nodes, TN), MN_pad)
    TB = min(256, _round_up(B, 8))
    grid = (N_pad // TN, pl.cdiv(B, TB))        # N outermost, batch innermost

    kernel = functools.partial(_decoder_kernel, approx_epilogue=approx_epilogue)

    def build_and_run(single_buffer_weights: bool):
        res_kw = ({"pipeline_mode": pl.Buffered(1)} if single_buffer_weights else {})
        in_specs = [
            # embedding: re-DMA per step (tiny: TB x E)
            pl.BlockSpec((TB, E), lambda j, i: (i, 0)),
            # weights/biases: constant block index -> VMEM-resident, DMA'd once,
            # single-buffered (no double-buffer VMEM waste).
            pl.BlockSpec((E, H2), lambda j, i: (0, 0), **res_kw),
            pl.BlockSpec((1, H2), lambda j, i: (0, 0), **res_kw),
            pl.BlockSpec((H2, H), lambda j, i: (0, 0), **res_kw),
            pl.BlockSpec((1, H), lambda j, i: (0, 0), **res_kw),
            # final_predict: block index depends only on the OUTER axis -> each
            # (H, 512) tile is streamed exactly once for the whole call.
            pl.BlockSpec((H, TN), lambda j, i: (0, j)),
        ]
        return pl.pallas_call(
            kernel,
            out_shape=jax.ShapeDtypeStruct((B, N_pad), out_dtype),
            grid_spec=pltpu.PrefetchScalarGridSpec(
                num_scalar_prefetch=0,
                grid=grid,
                in_specs=in_specs,
                out_specs=pl.BlockSpec((TB, TN), lambda j, i: (i, j)),
            ),
            compiler_params=pltpu.CompilerParams(
                # No cross-iteration scratch -> both axes independent; megacore
                # (v7x) can shard whichever axis has >= 2 tiles.
                dimension_semantics=("parallel", "parallel"),
                vmem_limit_bytes=_default_vmem_limit_bytes(),
            ),
            interpret=interpret,
        )(emb, w1, b1, w2, b2, fp)

    try:
        out = build_and_run(True)
    except Exception:
        # Fallback for JAX versions without BlockSpec.pipeline_mode / Buffered(1).
        out = build_and_run(False)

    # Padded fp columns produce sigmoid(0)=0.5 -> must be dropped unless N_pad
    # already equals num_nodes (then skip the extra HBM pass of the slice).
    if num_nodes != N_pad:
        out = out[:, :num_nodes]
    return out


def init_params(key, embedding_dim, hidden_dim, max_num_nodes):
    """Mirror the PyTorch module's parameters (f32 master copy).

    Linear weights stored transposed as [in, out]; final_predict stored with its
    last dim zero-padded to a multiple of 512 so the kernel always runs TN=512
    and never needs a per-call weight slice/copy.
    """
    k1, k2, k3, k4, k5 = jax.random.split(key, 5)

    def linear_init(kw, kb, fan_in, fan_out):
        bound = 1.0 / math.sqrt(fan_in)  # kaiming_uniform(a=sqrt(5)) bound
        w = jax.random.uniform(kw, (fan_in, fan_out), jnp.float32, -bound, bound)
        b = jax.random.uniform(kb, (1, fan_out), jnp.float32, -bound, bound)
        return w, b

    w1, b1 = linear_init(k1, k2, embedding_dim, hidden_dim * 2)
    w2, b2 = linear_init(k3, k4, hidden_dim * 2, hidden_dim)

    bound_fp = 1.0 / math.sqrt(hidden_dim)
    fp = jax.random.uniform(
        k5, (hidden_dim, max_num_nodes), jnp.float32, -bound_fp, bound_fp
    )
    mn_pad = _round_up(max_num_nodes, 512)
    fp = jnp.pad(fp, ((0, 0), (0, mn_pad - max_num_nodes)))  # one-time zero pad

    return {"w1": w1, "b1": b1, "w2": w2, "b2": b2, "final_predict": fp}


def cast_params_for_mxu(params, matmul_dtype):
    """One-time cast of the matmul weights to the MXU dtype (no per-call casts).
    Biases stay f32: they are added after f32 accumulation."""
    return {
        "w1": params["w1"].astype(matmul_dtype),
        "b1": params["b1"].astype(jnp.float32),
        "w2": params["w2"].astype(matmul_dtype),
        "b2": params["b2"].astype(jnp.float32),
        "final_predict": params["final_predict"].astype(matmul_dtype),
    }


def reference_forward(embedding, params, num_nodes):
    h = jax.nn.relu(embedding @ params["w1"] + params["b1"])
    h = jax.nn.relu(h @ params["w2"] + params["b2"])
    return jax.nn.sigmoid(h @ params["final_predict"][:, :num_nodes])


if __name__ == "__main__":
    # Small shapes consistent with the module's forward.
    batch = 8
    embedding_dim = 32
    hidden_dim = 32
    max_num_nodes = 64
    num_nodes = 48  # next_snapshot.num_nodes

    key = jax.random.PRNGKey(0)
    k_emb, k_params = jax.random.split(key)
    embedding = jax.random.normal(k_emb, (batch, embedding_dim), jnp.float32)
    params_f32 = init_params(k_params, embedding_dim, hidden_dim, max_num_nodes)

    ref = reference_forward(embedding, params_f32, num_nodes)

    # f32 path: tight check against the pure-JAX reference.
    out = decoder_forward(embedding, params_f32, num_nodes)
    out = jax.block_until_ready(out)
    assert out.shape == (batch, num_nodes), out.shape
    assert jnp.allclose(out, ref, atol=1e-5, rtol=1e-5), "f32 mismatch vs reference"

    # bf16-MXU path (weights stored once in bf16, f32 accumulation, approx epilogue):
    params_bf16 = cast_params_for_mxu(params_f32, jnp.bfloat16)
    out_bf16 = decoder_forward(embedding, params_bf16, num_nodes)
    out_bf16 = jax.block_until_ready(out_bf16)
    assert out_bf16.shape == (batch, num_nodes), out_bf16.shape
    assert jnp.allclose(out_bf16, ref, atol=2e-2, rtol=2e-2), "bf16 mismatch vs reference"

    print("KERNEL_OK")
</pallas_src>

<mosaic_0001>
module attributes {stable_mosaic.version = 11 : i64} {
  func.func @_decoder_kernel(%arg0: i32, %arg1: i32, %arg2: memref<8x32xf32, #tpu.memory_space<vmem>>, %arg3: memref<32x64xf32, #tpu.memory_space<vmem>>, %arg4: memref<1x64xf32, #tpu.memory_space<vmem>>, %arg5: memref<64x32xf32, #tpu.memory_space<vmem>>, %arg6: memref<1x32xf32, #tpu.memory_space<vmem>>, %arg7: memref<32x512xf32, #tpu.memory_space<vmem>>, %arg8: memref<8x512xf32, #tpu.memory_space<vmem>>) attributes {dimension_semantics = [#tpu.dimension_semantics<parallel>, #tpu.dimension_semantics<parallel>], iteration_bounds = array<i64: 1, 1>, scalar_prefetch = 0 : i64, scratch_operands = 0 : i64, tpu.core_type = #tpu.core_type<tc>, window_params = [{transform_indices = @transform_0, window_bounds = array<i64: 8, 32>}, {pipeline_mode = #tpu.pipeline_mode<synchronous>, transform_indices = @transform_1, window_bounds = array<i64: 32, 64>}, {pipeline_mode = #tpu.pipeline_mode<synchronous>, transform_indices = @transform_2, window_bounds = array<i64: 1, 64>}, {pipeline_mode = #tpu.pipeline_mode<synchronous>, transform_indices = @transform_3, window_bounds = array<i64: 64, 32>}, {pipeline_mode = #tpu.pipeline_mode<synchronous>, transform_indices = @transform_4, window_bounds = array<i64: 1, 32>}, {transform_indices = @transform_5, window_bounds = array<i64: 32, 512>}, {transform_indices = @transform_6, window_bounds = array<i64: 8, 512>}]} {
    %c0 = arith.constant 0 : index
    %c0_0 = arith.constant 0 : index
    %0 = vector.load %arg2[%c0, %c0_0] : memref<8x32xf32, #tpu.memory_space<vmem>>, vector<8x32xf32>
    %c0_1 = arith.constant 0 : index
    %c0_2 = arith.constant 0 : index
    %1 = vector.load %arg3[%c0_1, %c0_2] : memref<32x64xf32, #tpu.memory_space<vmem>>, vector<32x64xf32>
    %cst = arith.constant dense<0.000000e+00> : vector<8x64xf32>
    %2 = tpu.matmul %0, %1, %cst {dimension_numbers = #tpu.dot_dimension_numbers<[1], [0], [0], [1], [0, 0, 1, 1], [], []>} : vector<8x32xf32>, vector<32x64xf32>, vector<8x64xf32> -> vector<8x64xf32>
    %c0_3 = arith.constant 0 : index
    %c0_4 = arith.constant 0 : index
    %3 = vector.load %arg4[%c0_3, %c0_4] : memref<1x64xf32, #tpu.memory_space<vmem>>, vector<1x64xf32>
    %4 = vector.broadcast %3 : vector<1x64xf32> to vector<8x64xf32>
    %5 = arith.addf %2, %4 : vector<8x64xf32>
    %cst_5 = arith.constant 0.000000e+00 : f32
    %6 = vector.broadcast %cst_5 : f32 to vector<8x64xf32>
    %7 = arith.maximumf %5, %6 : vector<8x64xf32>
    %c0_6 = arith.constant 0 : index
    %c0_7 = arith.constant 0 : index
    %8 = vector.load %arg5[%c0_6, %c0_7] : memref<64x32xf32, #tpu.memory_space<vmem>>, vector<64x32xf32>
    %cst_8 = arith.constant dense<0.000000e+00> : vector<8x32xf32>
    %9 = tpu.matmul %7, %8, %cst_8 {dimension_numbers = #tpu.dot_dimension_numbers<[1], [0], [0], [1], [0, 0, 1, 1], [], []>} : vector<8x64xf32>, vector<64x32xf32>, vector<8x32xf32> -> vector<8x32xf32>
    %c0_9 = arith.constant 0 : index
    %c0_10 = arith.constant 0 : index
    %10 = vector.load %arg6[%c0_9, %c0_10] : memref<1x32xf32, #tpu.memory_space<vmem>>, vector<1x32xf32>
    %11 = vector.broadcast %10 : vector<1x32xf32> to vector<8x32xf32>
    %12 = arith.addf %9, %11 : vector<8x32xf32>
    %cst_11 = arith.constant 0.000000e+00 : f32
    %13 = vector.broadcast %cst_11 : f32 to vector<8x32xf32>
    %14 = arith.maximumf %12, %13 : vector<8x32xf32>
    %c0_12 = arith.constant 0 : index
    %c0_13 = arith.constant 0 : index
    %15 = vector.load %arg7[%c0_12, %c0_13] : memref<32x512xf32, #tpu.memory_space<vmem>>, vector<32x512xf32>
    %cst_14 = arith.constant dense<0.000000e+00> : vector<8x512xf32>
    %16 = tpu.matmul %14, %15, %cst_14 {dimension_numbers = #tpu.dot_dimension_numbers<[1], [0], [0], [1], [0, 0, 1, 1], [], []>} : vector<8x32xf32>, vector<32x512xf32>, vector<8x512xf32> -> vector<8x512xf32>
    %17 = arith.negf %16 : vector<8x512xf32>
    %18 = math.exp %17 : vector<8x512xf32>
    %cst_15 = arith.constant 1.000000e+00 : f32
    %19 = vector.broadcast %cst_15 : f32 to vector<8x512xf32>
    %20 = arith.addf %19, %18 : vector<8x512xf32>
    %21 = arith.divf %19, %20 : vector<8x512xf32>
    %c0_16 = arith.constant 0 : index
    %c0_17 = arith.constant 0 : index
    %22 = vector.load %arg8[%c0_16, %c0_17] : memref<8x512xf32, #tpu.memory_space<vmem>>, vector<8x512xf32>
    tpu.vector_store %arg8[%c0_16, %c0_17], %21 {strides = array<i32>} : memref<8x512xf32, #tpu.memory_space<vmem>>, vector<8x512xf32>,
    return
  }
  func.func @transform_0(%arg0: i32, %arg1: i32) -> (i32, i32) {
    %c0_i32 = arith.constant 0 : i32
    %c0_i32_0 = arith.constant 0 : i32
    return %arg1, %c0_i32 : i32, i32
  }
  func.func @transform_1(%arg0: i32, %arg1: i32) -> (i32, i32) {
    %c0_i32 = arith.constant 0 : i32
    %c0_i32_0 = arith.constant 0 : i32
    %c0_i32_1 = arith.constant 0 : i32
    return %c0_i32, %c0_i32_0 : i32, i32
  }
  func.func @transform_2(%arg0: i32, %arg1: i32) -> (i32, i32) {
    %c0_i32 = arith.constant 0 : i32
    %c0_i32_0 = arith.constant 0 : i32
    %c0_i32_1 = arith.constant 0 : i32
    return %c0_i32, %c0_i32_0 : i32, i32
  }
  func.func @transform_3(%arg0: i32, %arg1: i32) -> (i32, i32) {
    %c0_i32 = arith.constant 0 : i32
    %c0_i32_0 = arith.constant 0 : i32
    %c0_i32_1 = arith.constant 0 : i32
    return %c0_i32, %c0_i32_0 : i32, i32
  }
  func.func @transform_4(%arg0: i32, %arg1: i32) -> (i32, i32) {
    %c0_i32 = arith.constant 0 : i32
    %c0_i32_0 = arith.constant 0 : i32
    %c0_i32_1 = arith.constant 0 : i32
    return %c0_i32, %c0_i32_0 : i32, i32
  }
  func.func @transform_5(%arg0: i32, %arg1: i32) -> (i32, i32) {
    %c0_i32 = arith.constant 0 : i32
    %c0_i32_0 = arith.constant 0 : i32
    return %c0_i32, %arg0 : i32, i32
  }
  func.func @transform_6(%arg0: i32, %arg1: i32) -> (i32, i32) {
    %c0_i32 = arith.constant 0 : i32
    return %arg1, %arg0 : i32, i32
  }
}

module attributes {stable_mosaic.version = 11 : i64} {
  func.func @_decoder_kernel(%arg0: i32, %arg1: i32, %arg2: memref<8x32xf32, #tpu.memory_space<vmem>>, %arg3: memref<32x64xf32, #tpu.memory_space<vmem>>, %arg4: memref<1x64xf32, #tpu.memory_space<vmem>>, %arg5: memref<64x32xf32, #tpu.memory_space<vmem>>, %arg6: memref<1x32xf32, #tpu.memory_space<vmem>>, %arg7: memref<32x512xf32, #tpu.memory_space<vmem>>, %arg8: memref<8x512xf32, #tpu.memory_space<vmem>>) attributes {dimension_semantics = [#tpu.dimension_semantics<parallel>, #tpu.dimension_semantics<parallel>], iteration_bounds = array<i64: 1, 1>, scalar_prefetch = 0 : i64, scratch_operands = 0 : i64, tpu.core_type = #tpu.core_type<tc>, window_params = [{transform_indices = @transform_0, window_bounds = array<i64: 8, 32>}, {pipeline_mode = #tpu.pipeline_mode<synchronous>, transform_indices = @transform_1, window_bounds = array<i64: 32, 64>}, {pipeline_mode = #tpu.pipeline_mode<synchronous>, transform_indices = @transform_2, window_bounds = array<i64: 1, 64>}, {pipeline_mode = #tpu.pipeline_mode<synchronous>, transform_indices = @transform_3, window_bounds = array<i64: 64, 32>}, {pipeline_mode = #tpu.pipeline_mode<synchronous>, transform_indices = @transform_4, window_bounds = array<i64: 1, 32>}, {transform_indices = @transform_5, window_bounds = array<i64: 32, 512>}, {transform_indices = @transform_6, window_bounds = array<i64: 8, 512>}]} {
    %c0 = arith.constant 0 : index
    %c0_0 = arith.constant 0 : index
    %0 = vector.load %arg2[%c0, %c0_0] : memref<8x32xf32, #tpu.memory_space<vmem>>, vector<8x32xf32>
    %c0_1 = arith.constant 0 : index
    %c0_2 = arith.constant 0 : index
    %1 = vector.load %arg3[%c0_1, %c0_2] : memref<32x64xf32, #tpu.memory_space<vmem>>, vector<32x64xf32>
    %cst = arith.constant dense<0.000000e+00> : vector<8x64xf32>
    %2 = tpu.matmul %0, %1, %cst {dimension_numbers = #tpu.dot_dimension_numbers<[1], [0], [0], [1], [0, 0, 1, 1], [], []>} : vector<8x32xf32>, vector<32x64xf32>, vector<8x64xf32> -> vector<8x64xf32>
    %c0_3 = arith.constant 0 : index
    %c0_4 = arith.constant 0 : index
    %3 = vector.load %arg4[%c0_3, %c0_4] : memref<1x64xf32, #tpu.memory_space<vmem>>, vector<1x64xf32>
    %4 = vector.broadcast %3 : vector<1x64xf32> to vector<8x64xf32>
    %5 = arith.addf %2, %4 : vector<8x64xf32>
    %cst_5 = arith.constant 0.000000e+00 : f32
    %6 = vector.broadcast %cst_5 : f32 to vector<8x64xf32>
    %7 = arith.maximumf %5, %6 : vector<8x64xf32>
    %c0_6 = arith.constant 0 : index
    %c0_7 = arith.constant 0 : index
    %8 = vector.load %arg5[%c0_6, %c0_7] : memref<64x32xf32, #tpu.memory_space<vmem>>, vector<64x32xf32>
    %cst_8 = arith.constant dense<0.000000e+00> : vector<8x32xf32>
    %9 = tpu.matmul %7, %8, %cst_8 {dimension_numbers = #tpu.dot_dimension_numbers<[1], [0], [0], [1], [0, 0, 1, 1], [], []>} : vector<8x64xf32>, vector<64x32xf32>, vector<8x32xf32> -> vector<8x32xf32>
    %c0_9 = arith.constant 0 : index
    %c0_10 = arith.constant 0 : index
    %10 = vector.load %arg6[%c0_9, %c0_10] : memref<1x32xf32, #tpu.memory_space<vmem>>, vector<1x32xf32>
    %11 = vector.broadcast %10 : vector<1x32xf32> to vector<8x32xf32>
    %12 = arith.addf %9, %11 : vector<8x32xf32>
    %cst_11 = arith.constant 0.000000e+00 : f32
    %13 = vector.broadcast %cst_11 : f32 to vector<8x32xf32>
    %14 = arith.maximumf %12, %13 : vector<8x32xf32>
    %c0_12 = arith.constant 0 : index
    %c0_13 = arith.constant 0 : index
    %15 = vector.load %arg7[%c0_12, %c0_13] : memref<32x512xf32, #tpu.memory_space<vmem>>, vector<32x512xf32>
    %cst_14 = arith.constant dense<0.000000e+00> : vector<8x512xf32>
    %16 = tpu.matmul %14, %15, %cst_14 {dimension_numbers = #tpu.dot_dimension_numbers<[1], [0], [0], [1], [0, 0, 1, 1], [], []>} : vector<8x32xf32>, vector<32x512xf32>, vector<8x512xf32> -> vector<8x512xf32>
    %17 = arith.negf %16 : vector<8x512xf32>
    %18 = math.exp %17 : vector<8x512xf32>
    %cst_15 = arith.constant 1.000000e+00 : f32
    %19 = vector.broadcast %cst_15 : f32 to vector<8x512xf32>
    %20 = arith.addf %19, %18 : vector<8x512xf32>
    %21 = arith.divf %19, %20 : vector<8x512xf32>
    %c0_16 = arith.constant 0 : index
    %c0_17 = arith.constant 0 : index
    %22 = vector.load %arg8[%c0_16, %c0_17] : memref<8x512xf32, #tpu.memory_space<vmem>>, vector<8x512xf32>
    tpu.vector_store %arg8[%c0_16, %c0_17], %21 {strides = array<i32>} : memref<8x512xf32, #tpu.memory_space<vmem>>, vector<8x512xf32>,
    return
  }
  func.func @transform_0(%arg0: i32, %arg1: i32) -> (i32, i32) {
    %c0_i32 = arith.constant 0 : i32
    %c0_i32_0 = arith.constant 0 : i32
    return %arg1, %c0_i32 : i32, i32
  }
  func.func @transform_1(%arg0: i32, %arg1: i32) -> (i32, i32) {
    %c0_i32 = arith.constant 0 : i32
    %c0_i32_0 = arith.constant 0 : i32
    %c0_i32_1 = arith.constant 0 : i32
    return %c0_i32, %c0_i32_0 : i32, i32
  }
  func.func @transform_2(%arg0: i32, %arg1: i32) -> (i32, i32) {
    %c0_i32 = arith.constant 0 : i32
    %c0_i32_0 = arith.constant 0 : i32
    %c0_i32_1 = arith.constant 0 : i32
    return %c0_i32, %c0_i32_0 : i32, i32
  }
  func.func @transform_3(%arg0: i32, %arg1: i32) -> (i32, i32) {
    %c0_i32 = arith.constant 0 : i32
    %c0_i32_0 = arith.constant 0 : i32
    %c0_i32_1 = arith.constant 0 : i32
    return %c0_i32, %c0_i32_0 : i32, i32
  }
  func.func @transform_4(%arg0: i32, %arg1: i32) -> (i32, i32) {
    %c0_i32 = arith.constant 0 : i32
    %c0_i32_0 = arith.constant 0 : i32
    %c0_i32_1 = arith.constant 0 : i32
    return %c0_i32, %c0_i32_0 : i32, i32
  }
  func.func @transform_5(%arg0: i32, %arg1: i32) -> (i32, i32) {
    %c0_i32 = arith.constant 0 : i32
    %c0_i32_0 = arith.constant 0 : i32
    return %c0_i32, %arg0 : i32, i32
  }
  func.func @transform_6(%arg0: i32, %arg1: i32) -> (i32, i32) {
    %c0_i32 = arith.constant 0 : i32
    return %arg1, %arg0 : i32, i32
  }
}

</mosaic_0001>

<bundles_post_ra>
// kernel: tpu_custom_call.1
= control target key start
LH: loop header
LB: loop body
LE: loop exit
PB: predicated region body
PF: predicated region fallthrough
CT: control target
= control target key end

     0   :  { %11 = vsyncpa [#allocation3], 0  ;;  %s696_s0 = inlined_call_operand.vmem [shape: f32[8,32], index: 0, kind: input, shape index: {}]   ;;  %s697_s1 = inlined_call_operand.vmem [shape: f32[32,64], index: 1, kind: input, shape index: {}]   ;;  %s698_s2 = inlined_call_operand.vmem [shape: f32[1,64], index: 2, kind: input, shape index: {}]   ;;  %s699_s3 = inlined_call_operand.vmem [shape: f32[64,32], index: 3, kind: input, shape index: {}]   ;;  %s700_s4 = inlined_call_operand.vmem [shape: f32[1,32], index: 4, kind: input, shape index: {}]   ;;  %s701_s5 = inlined_call_operand.hbm [shape: f32[32,512], index: 5, kind: input, shape index: {}]   ;;  %s702_s6 = inlined_call_operand.hbm [shape: f32[8,512], index: 6, kind: output, shape index: {}]  }
   0x1   :  { %12 = vsyncpa [#allocation4], 0  ;;  %s578_s21 = smov [#allocation2]   ;;  %s530_s25 = scalar_lea.hbm %s701_s5, 2048 }
   0x2   :  { %s28_s22 = sshll.u32 %s578_s21, 4  ;;  %p531_p0 = scmp.ne.s32.totalorder %s701_s5, %s530_s25  ;;  %s29_s22 = int_to_ptr.vmem [resolvable:$true] %s28_s22 }
   0x3   :  { %p534_p1 = scmp.lt.u32.totalorder %s530_s25, %s701_s5 }
   0x5   :  { %p536_p2 = pnand %p534_p1, %p531_p0 }
   0x7   :  { %539 = shalt.err (!%p536_p2)
}
   0x8   :  { %s540_s30 = scalar_lea.vmem %s29_s22, 2048  ;;  %p545_p4 = scmp.lt.s32.totalorder %s29_s22, %s29_s22 }
   0x9   :  { %p541_p3 = scmp.ne.s32.totalorder %s29_s22, %s540_s30  ;;  %p546_p5 = scmp.lt.s32.totalorder %s540_s30, %s540_s30 }
   0xb   :  { %p547_p6 = por %p546_p5, %p545_p4 }
   0xd   :  { %p548_p7 = pnand %p547_p6, %p541_p3 }
   0xf   :  { %551 = shalt.err (!%p548_p7)
}
  0x10   :  { %s579_s7 = smov 512   ;;  %s580_s8 = smov 32  }
  0x11   :  { %34 = dma.hbm_to_vmem [thread:$0]  %s701_s5, 2048, %s29_s22, [#allocation3], %s579_s7, %s579_s7, %s580_s8  }
  0x12   :  { %574 = dma.done.wait [#allocation3], 2048  }
  0x13   :  { %575 = vsyncadd [#allocation3], 4294965248  ;;  %v581_v0 = vmov 0.0|0.0   ;;  %vm582_vm0 = vmmov 0   ;;  %v583_v1 = vmov 0.0   ;;  %v39_v2 = vld [vmem:[%s697_s1] sm:$0xff] }
  0x14   :  { %473 = vmatprep.subr.bf16.mxu0 %v581_v0  ;;  %451 = vmatprep.mubr.msk.f32.mxu0 %vm582_vm0, %v583_v1  ;;  %v40_v3 = vld [vmem:[%s697_s1 + $0x8] sm:$0xff]  ;;  %v41_v4 = vld [vmem:[%s697_s1 + $0x10] sm:$0xff]  ;;  %v42_v6 = vld [vmem:[%s697_s1 + $0x18] sm:$0xff]  ;;  %vm50_vm1 = vcmask 261120   ;;  %vm140_vm2 = vcmask 523264  }
  0x15   :  { %479 = vmatprep.subr.bf16.mxu1 %v581_v0  ;;  %470 = vmatprep.mubr.msk.f32.mxu1 %vm582_vm0, %v583_v1  ;;  %v474_v5 = vpack.c.bf16 %v40_v3, %v39_v2  ;;  %v125_v7 = vld [vmem:[%s699_s3] sm:$0xff]  ;;  %v126_v8 = vld [vmem:[%s699_s3 + $0x8] sm:$0xff]  ;;  %v127_v9 = vld [vmem:[%s699_s3 + $0x10] sm:$0xff]  ;;  %v477_v11 = vpack.c.bf16 %v42_v6, %v41_v4 }
  0x16   :  { %v128_v10 = vld [vmem:[%s699_s3 + $0x18] sm:$0xff]  ;;  %v480_v12 = vpack.c.bf16 %v126_v8, %v125_v7  ;;  %v129_v14 = vld [vmem:[%s699_s3 + $0x20] sm:$0xff]  ;;  %v130_v15 = vld [vmem:[%s699_s3 + $0x28] sm:$0xff] }
  0x17   :  { %475 = vmatpush3.bf16.msra.mxu0 %v474_v5  ;;  %v483_v13 = vpack.c.bf16 %v128_v10, %v127_v9  ;;  %v38_v16 = vld [vmem:[%s696_s0] sm:$0xff]  ;;  %v486_v17 = vpack.c.bf16 %v130_v15, %v129_v14  ;;  %v131_v18 = vld [vmem:[%s699_s3 + $0x30] sm:$0xff]  ;;  %v132_v19 = vld [vmem:[%s699_s3 + $0x38] sm:$0xff] }
  0x18   :  { %476 = vmatprep.subr.bf16.mxu0 %v581_v0  ;;  %481 = vmatpush3.bf16.msra.mxu1 %v480_v12  ;;  %v489_v20 = vpack.c.bf16 %v132_v19, %v131_v18  ;;  %v216_v21 = vld [vmem:[#allocation2 + $0x8] sm:$0xff]  ;;  %v215_v23 = vld [vmem:[#allocation2] sm:$0xff]  ;;  %v218_v38 = vld [vmem:[#allocation2 + $0x18] sm:$0xff] }
  0x19   :  { %482 = vmatprep.subr.bf16.mxu1 %v581_v0  ;;  %v220_v22 = vld [vmem:[#allocation2 + $0x28] sm:$0xff]  ;;  %v219_v25 = vld [vmem:[#allocation2 + $0x20] sm:$0xff]  ;;  %v222_v39 = vld [vmem:[#allocation2 + $0x38] sm:$0xff] }
  0x1a   :  { %v491_v24 = vpack.c.bf16 %v220_v22, %v216_v21  ;;  %v493_v26 = vpack.c.bf16 %v219_v25, %v215_v23  ;;  %v419_v27 = vld [vmem:[%s698_s2] ss:$0 sm:$0xff]  ;;  %v224_v32 = vld [vmem:[#allocation2 + $0x48] sm:$0xff]  ;;  %v499_v40 = vpack.c.bf16 %v222_v39, %v218_v38  ;;  %v217_v42 = vld [vmem:[#allocation2 + $0x10] sm:$0xff] }
  0x1b   :  { %478 = vmatpush3.bf16.msra.mxu0 %v477_v11  ;;  %v228_v33 = vld [vmem:[#allocation2 + $0x68] sm:$0xff]  ;;  %v223_v35 = vld [vmem:[#allocation2 + $0x40] sm:$0xff]  ;;  %v221_v43 = vld [vmem:[#allocation2 + $0x30] sm:$0xff] }
  0x1c   :  { %484 = vmatpush3.bf16.msra.mxu1 %v483_v13  ;;  %492 = vmatprep.subr.bf16.mxu0 %v491_v24  ;;  %v495_v34 = vpack.c.bf16 %v228_v33, %v224_v32  ;;  %v227_v36 = vld [vmem:[#allocation2 + $0x60] sm:$0xff]  ;;  %v226_v45 = vld [vmem:[#allocation2 + $0x58] sm:$0xff]  ;;  %v501_v49 = vpack.c.bf16 %v221_v43, %v217_v42  ;;  %v225_v52 = vld [vmem:[#allocation2 + $0x50] sm:$0xff] }
  0x1d   :  { %485 = vmatprep.subr.bf16.mxu1 %v581_v0  ;;  %v497_v37 = vpack.c.bf16 %v227_v36, %v223_v35  ;;  %v421_v41 = vld [vmem:[%s700_s4] ss:$0 sm:$0xff]  ;;  %v230_v46 = vld [vmem:[#allocation2 + $0x78] sm:$0xff]  ;;  %v229_v53 = vld [vmem:[#allocation2 + $0x70] sm:$0xff]  ;;  %s584_s4 = smov [#allocation5]  }
  0x1e   :  { %452 = vmatmul.mubr.msk.f32.vlgmr.msra.gmra.mrb[0].mxu0 %vm50_vm1, %v38_v16  ;;  %v503_v51 = vpack.c.bf16 %v230_v46, %v226_v45  ;;  %v505_v54 = vpack.c.bf16 %v229_v53, %v225_v52  ;;  %s410_s12 = sshll.u32 %s584_s4, 4  ;;  %s411_s12 = int_to_ptr.vmem [resolvable:$true] %s410_s12 }
  0x1f   :  { %298 = vmatprep.mubr.f32.mxu0 %v583_v1  ;;  %494 = vmatpush1.bf16.msra.mxu0 %v493_v26  ;;  %s552_s13 = scalar_lea.vmem %s411_s12, 512  ;;  %p557_p9 = scmp.lt.s32.totalorder %s411_s12, %s411_s12 }
  0x20   :  { %487 = vmatpush3.bf16.msra.mxu1 %v486_v17  ;;  %496 = vmatprep.subr.bf16.mxu0 %v495_v34  ;;  %p553_p8 = scmp.ne.s32.totalorder %s411_s12, %s552_s13  ;;  %p558_p10 = scmp.lt.s32.totalorder %s552_s13, %s552_s13 }
  0x21   :  { %488 = vmatprep.subr.bf16.mxu1 %v581_v0 }
  0x22   :  { %p559_p11 = por %p558_p10, %p557_p9 }
  0x23   :  { %498 = vmatpush1.bf16.msra.mxu0 %v497_v37 }
  0x24   :  { %490 = vmatpush3.bf16.msra.mxu1 %v489_v20  ;;  %500 = vmatprep.subr.bf16.mxu0 %v499_v40  ;;  %p560_p12 = pnand %p559_p11, %p553_p8 }
  0xf1   :  { %v120_v28 = vpop.f32.mrb[0].mxu0 }
  0xf2   :  { %v121_v29 = vadd.f32 %v419_v27, %v120_v28  ;;  %v453_v30 = vpop.f32.mrb[1].mxu0 }
  0xf4   :  { %v124_v31 = vmax.f32 %v121_v29, 0.0 }
  0xf6   :  { %471 = vmatmul.mubr.msk.f32.vlgmr.msra.gmra.mrb[0].mxu1 %vm140_vm2, %v124_v31 }
 0x1c9   :  { %v210_v44 = vpop.f32.mrb[0].mxu1 }
 0x1ca   :  { %v211_v47 = vadd.f32 %v421_v41, %v210_v44  ;;  %v472_v48 = vpop.f32.mrb[1].mxu1 }
 0x1cc   :  { %v214_v50 = vmax.f32 %v211_v47, 0.0 }
 0x1ce   :  { %423 = vmatmul.mubr.msk.f32.vlgmr.msra.gmra.mrb[2].mxu0 %vm50_vm1, %v214_v50 }
 0x1cf   :  { %502 = vmatpush1.bf16.msra.mxu0 %v501_v49  ;;  %369 = vmatprep.mubr.f32.mxu0 %v583_v1 }
 0x1d0   :  { %504 = vmatprep.subr.bf16.mxu0 %v503_v51 }
 0x1d3   :  { %506 = vmatpush1.bf16.msra.mxu0 %v505_v54 }
 0x1d6   :  { %424 = vmatmul.mubr.msk.f32.vlgmr.msra.gmra.mrb[4].mxu0 %vm50_vm1, %v214_v50 }
 0x2a1   :  { %v300_v55 = vpop.f32.mrb[2].mxu0 }
 0x2a2   :  { %v425_v56 = vmul.f32 -1.442695, %v300_v55  ;;  %v302_v57 = vpop.f32.mrb[3].mxu0 }
 0x2a3   :  { %v426_v58 = vmul.f32 -1.442695, %v302_v57 }
 0x2a4   :  { %514 = vpow2.f32 %v425_v56 }
 0x2a5   :  { %516 = vpow2.f32 %v426_v58 }
 0x2a9   :  { %v371_v59 = vpop.f32.mrb[4].mxu0 }
 0x2aa   :  { %v427_v60 = vmul.f32 -1.442695, %v371_v59  ;;  %v373_v61 = vpop.f32.mrb[5].mxu0 }
 0x2ab   :  { %v428_v62 = vmul.f32 -1.442695, %v373_v61 }
 0x2ac   :  { %518 = vpow2.f32 %v427_v60 }
 0x2ad   :  { %520 = vpow2.f32 %v428_v62 }
 0x2ae   :  { %v515_v63 = vpop.eup %514 }
 0x2af   :  { %v517_v0 = vpop.eup %516  ;;  %v388_v2 = vadd.f32 1.0, %v515_v63 }
 0x2b0   :  { %v389_v1 = vadd.f32 1.0, %v517_v0 }
 0x2b1   :  { %522 = vrcp.f32 %v388_v2 }
 0x2b2   :  { %524 = vrcp.f32 %v389_v1 }
 0x2b6   :  { %v519_v3 = vpop.eup %518 }
 0x2b7   :  { %v521_v4 = vpop.eup %520  ;;  %v390_v5 = vadd.f32 1.0, %v519_v3 }
 0x2b8   :  { %v391_v6 = vadd.f32 1.0, %v521_v4 }
 0x2b9   :  { %526 = vrcp.f32 %v390_v5 }
 0x2ba   :  { %528 = vrcp.f32 %v391_v6 }
 0x2bb   :  { %v523_v7 = vpop.eup %522 }
 0x2bc   :  { %v525_v8 = vpop.eup %524  ;;  %400 = vst [vmem:[#allocation5] sm:$0xff] %v523_v7 }
 0x2bd   :  { %401 = vst [vmem:[#allocation5 + $0x8] sm:$0xff] %v525_v8 }
 0x2c3   :  { %v527_v9 = vpop.eup %526 }
 0x2c4   :  { %v529_v10 = vpop.eup %528  ;;  %402 = vst [vmem:[#allocation5 + $0x10] sm:$0xff] %v527_v9 }
 0x2c5   :  { %403 = vst [vmem:[#allocation5 + $0x18] sm:$0xff] %v529_v10 }
 0x2c6   :  { %563 = shalt.err (!%p560_p12)
}
 0x2c7   :  { %s564_s15 = scalar_lea.hbm %s702_s6, 512 }
 0x2c8   :  { %p565_p13 = scmp.ne.s32.totalorder %s702_s6, %s564_s15  ;;  %p568_p0 = scmp.lt.u32.totalorder %s564_s15, %s702_s6 }
 0x2ca   :  { %p570_p1 = pnand %p568_p0, %p565_p13 }
 0x2cc   :  { %573 = shalt.err (!%p570_p1)
}
 0x2cd   :  { %413 = dma.vmem_to_hbm [thread:$0]  %s411_s12, 512, %s702_s6, [#allocation4]  }
 0x2ce   :  { %576 = dma.done.wait [#allocation4], 512  }
 0x2cf   :  { %577 = vsyncadd [#allocation4], 4294966784 }
 0x2d0   :  { %417 = vsyncpa [#allocation3], 1 }
 0x2d1   :  { %418 = vsyncpa [#allocation4], 1 }

// kernel: tpu_custom_call.1
= control target key start
LH: loop header
LB: loop body
LE: loop exit
PB: predicated region body
PF: predicated region fallthrough
CT: control target
= control target key end

     0   :  { %11 = vsyncpa [#allocation3], 0  ;;  %s696_s0 = inlined_call_operand.vmem [shape: f32[8,32], index: 0, kind: input, shape index: {}]   ;;  %s697_s1 = inlined_call_operand.vmem [shape: f32[32,64], index: 1, kind: input, shape index: {}]   ;;  %s698_s2 = inlined_call_operand.vmem [shape: f32[1,64], index: 2, kind: input, shape index: {}]   ;;  %s699_s3 = inlined_call_operand.vmem [shape: f32[64,32], index: 3, kind: input, shape index: {}]   ;;  %s700_s4 = inlined_call_operand.vmem [shape: f32[1,32], index: 4, kind: input, shape index: {}]   ;;  %s701_s5 = inlined_call_operand.hbm [shape: f32[32,512], index: 5, kind: input, shape index: {}]   ;;  %s702_s6 = inlined_call_operand.hbm [shape: f32[8,512], index: 6, kind: output, shape index: {}]  }
   0x1   :  { %12 = vsyncpa [#allocation4], 0  ;;  %s578_s21 = smov [#allocation2]   ;;  %s530_s25 = scalar_lea.hbm %s701_s5, 2048 }
   0x2   :  { %s28_s22 = sshll.u32 %s578_s21, 4  ;;  %p531_p0 = scmp.ne.s32.totalorder %s701_s5, %s530_s25  ;;  %s29_s22 = int_to_ptr.vmem [resolvable:$true] %s28_s22 }
   0x3   :  { %p534_p1 = scmp.lt.u32.totalorder %s530_s25, %s701_s5 }
   0x5   :  { %p536_p2 = pnand %p534_p1, %p531_p0 }
   0x7   :  { %539 = shalt.err (!%p536_p2)
}
   0x8   :  { %s540_s30 = scalar_lea.vmem %s29_s22, 2048  ;;  %p545_p4 = scmp.lt.s32.totalorder %s29_s22, %s29_s22 }
   0x9   :  { %p541_p3 = scmp.ne.s32.totalorder %s29_s22, %s540_s30  ;;  %p546_p5 = scmp.lt.s32.totalorder %s540_s30, %s540_s30 }
   0xb   :  { %p547_p6 = por %p546_p5, %p545_p4 }
   0xd   :  { %p548_p7 = pnand %p547_p6, %p541_p3 }
   0xf   :  { %551 = shalt.err (!%p548_p7)
}
  0x10   :  { %s579_s7 = smov 512   ;;  %s580_s8 = smov 32  }
  0x11   :  { %34 = dma.hbm_to_vmem [thread:$0]  %s701_s5, 2048, %s29_s22, [#allocation3], %s579_s7, %s579_s7, %s580_s8  }
  0x12   :  { %574 = dma.done.wait [#allocation3], 2048  }
  0x13   :  { %575 = vsyncadd [#allocation3], 4294965248  ;;  %v581_v0 = vmov 0.0|0.0   ;;  %vm582_vm0 = vmmov 0   ;;  %v583_v1 = vmov 0.0   ;;  %v39_v2 = vld [vmem:[%s697_s1] sm:$0xff] }
  0x14   :  { %473 = vmatprep.subr.bf16.mxu0 %v581_v0  ;;  %451 = vmatprep.mubr.msk.f32.mxu0 %vm582_vm0, %v583_v1  ;;  %v40_v3 = vld [vmem:[%s697_s1 + $0x8] sm:$0xff]  ;;  %v41_v4 = vld [vmem:[%s697_s1 + $0x10] sm:$0xff]  ;;  %v42_v6 = vld [vmem:[%s697_s1 + $0x18] sm:$0xff]  ;;  %vm50_vm1 = vcmask 261120   ;;  %vm140_vm2 = vcmask 523264  }
  0x15   :  { %479 = vmatprep.subr.bf16.mxu1 %v581_v0  ;;  %470 = vmatprep.mubr.msk.f32.mxu1 %vm582_vm0, %v583_v1  ;;  %v474_v5 = vpack.c.bf16 %v40_v3, %v39_v2  ;;  %v125_v7 = vld [vmem:[%s699_s3] sm:$0xff]  ;;  %v126_v8 = vld [vmem:[%s699_s3 + $0x8] sm:$0xff]  ;;  %v127_v9 = vld [vmem:[%s699_s3 + $0x10] sm:$0xff]  ;;  %v477_v11 = vpack.c.bf16 %v42_v6, %v41_v4 }
  0x16   :  { %v128_v10 = vld [vmem:[%s699_s3 + $0x18] sm:$0xff]  ;;  %v480_v12 = vpack.c.bf16 %v126_v8, %v125_v7  ;;  %v129_v14 = vld [vmem:[%s699_s3 + $0x20] sm:$0xff]  ;;  %v130_v15 = vld [vmem:[%s699_s3 + $0x28] sm:$0xff] }
  0x17   :  { %475 = vmatpush3.bf16.msra.mxu0 %v474_v5  ;;  %v483_v13 = vpack.c.bf16 %v128_v10, %v127_v9  ;;  %v38_v16 = vld [vmem:[%s696_s0] sm:$0xff]  ;;  %v486_v17 = vpack.c.bf16 %v130_v15, %v129_v14  ;;  %v131_v18 = vld [vmem:[%s699_s3 + $0x30] sm:$0xff]  ;;  %v132_v19 = vld [vmem:[%s699_s3 + $0x38] sm:$0xff] }
  0x18   :  { %476 = vmatprep.subr.bf16.mxu0 %v581_v0  ;;  %481 = vmatpush3.bf16.msra.mxu1 %v480_v12  ;;  %v489_v20 = vpack.c.bf16 %v132_v19, %v131_v18  ;;  %v216_v21 = vld [vmem:[#allocation2 + $0x8] sm:$0xff]  ;;  %v215_v23 = vld [vmem:[#allocation2] sm:$0xff]  ;;  %v218_v38 = vld [vmem:[#allocation2 + $0x18] sm:$0xff] }
  0x19   :  { %482 = vmatprep.subr.bf16.mxu1 %v581_v0  ;;  %v220_v22 = vld [vmem:[#allocation2 + $0x28] sm:$0xff]  ;;  %v219_v25 = vld [vmem:[#allocation2 + $0x20] sm:$0xff]  ;;  %v222_v39 = vld [vmem:[#allocation2 + $0x38] sm:$0xff] }
  0x1a   :  { %v491_v24 = vpack.c.bf16 %v220_v22, %v216_v21  ;;  %v493_v26 = vpack.c.bf16 %v219_v25, %v215_v23  ;;  %v419_v27 = vld [vmem:[%s698_s2] ss:$0 sm:$0xff]  ;;  %v224_v32 = vld [vmem:[#allocation2 + $0x48] sm:$0xff]  ;;  %v499_v40 = vpack.c.bf16 %v222_v39, %v218_v38  ;;  %v217_v42 = vld [vmem:[#allocation2 + $0x10] sm:$0xff] }
  0x1b   :  { %478 = vmatpush3.bf16.msra.mxu0 %v477_v11  ;;  %v228_v33 = vld [vmem:[#allocation2 + $0x68] sm:$0xff]  ;;  %v223_v35 = vld [vmem:[#allocation2 + $0x40] sm:$0xff]  ;;  %v221_v43 = vld [vmem:[#allocation2 + $0x30] sm:$0xff] }
  0x1c   :  { %484 = vmatpush3.bf16.msra.mxu1 %v483_v13  ;;  %492 = vmatprep.subr.bf16.mxu0 %v491_v24  ;;  %v495_v34 = vpack.c.bf16 %v228_v33, %v224_v32  ;;  %v227_v36 = vld [vmem:[#allocation2 + $0x60] sm:$0xff]  ;;  %v226_v45 = vld [vmem:[#allocation2 + $0x58] sm:$0xff]  ;;  %v501_v49 = vpack.c.bf16 %v221_v43, %v217_v42  ;;  %v225_v52 = vld [vmem:[#allocation2 + $0x50] sm:$0xff] }
  0x1d   :  { %485 = vmatprep.subr.bf16.mxu1 %v581_v0  ;;  %v497_v37 = vpack.c.bf16 %v227_v36, %v223_v35  ;;  %v421_v41 = vld [vmem:[%s700_s4] ss:$0 sm:$0xff]  ;;  %v230_v46 = vld [vmem:[#allocation2 + $0x78] sm:$0xff]  ;;  %v229_v53 = vld [vmem:[#allocation2 + $0x70] sm:$0xff]  ;;  %s584_s4 = smov [#allocation5]  }
  0x1e   :  { %452 = vmatmul.mubr.msk.f32.vlgmr.msra.gmra.mrb[0].mxu0 %vm50_vm1, %v38_v16  ;;  %v503_v51 = vpack.c.bf16 %v230_v46, %v226_v45  ;;  %v505_v54 = vpack.c.bf16 %v229_v53, %v225_v52  ;;  %s410_s12 = sshll.u32 %s584_s4, 4  ;;  %s411_s12 = int_to_ptr.vmem [resolvable:$true] %s410_s12 }
  0x1f   :  { %298 = vmatprep.mubr.f32.mxu0 %v583_v1  ;;  %494 = vmatpush1.bf16.msra.mxu0 %v493_v26  ;;  %s552_s13 = scalar_lea.vmem %s411_s12, 512  ;;  %p557_p9 = scmp.lt.s32.totalorder %s411_s12, %s411_s12 }
  0x20   :  { %487 = vmatpush3.bf16.msra.mxu1 %v486_v17  ;;  %496 = vmatprep.subr.bf16.mxu0 %v495_v34  ;;  %p553_p8 = scmp.ne.s32.totalorder %s411_s12, %s552_s13  ;;  %p558_p10 = scmp.lt.s32.totalorder %s552_s13, %s552_s13 }
  0x21   :  { %488 = vmatprep.subr.bf16.mxu1 %v581_v0 }
  0x22   :  { %p559_p11 = por %p558_p10, %p557_p9 }
  0x23   :  { %498 = vmatpush1.bf16.msra.mxu0 %v497_v37 }
  0x24   :  { %490 = vmatpush3.bf16.msra.mxu1 %v489_v20  ;;  %500 = vmatprep.subr.bf16.mxu0 %v499_v40  ;;  %p560_p12 = pnand %p559_p11, %p553_p8 }
  0xf1   :  { %v120_v28 = vpop.f32.mrb[0].mxu0 }
  0xf2   :  { %v121_v29 = vadd.f32 %v419_v27, %v120_v28  ;;  %v453_v30 = vpop.f32.mrb[1].mxu0 }
  0xf4   :  { %v124_v31 = vmax.f32 %v121_v29, 0.0 }
  0xf6   :  { %471 = vmatmul.mubr.msk.f32.vlgmr.msra.gmra.mrb[0].mxu1 %vm140_vm2, %v124_v31 }
 0x1c9   :  { %v210_v44 = vpop.f32.mrb[0].mxu1 }
 0x1ca   :  { %v211_v47 = vadd.f32 %v421_v41, %v210_v44  ;;  %v472_v48 = vpop.f32.mrb[1].mxu1 }
 0x1cc   :  { %v214_v50 = vmax.f32 %v211_v47, 0.0 }
 0x1ce   :  { %423 = vmatmul.mubr.msk.f32.vlgmr.msra.gmra.mrb[2].mxu0 %vm50_vm1, %v214_v50 }
 0x1cf   :  { %502 = vmatpush1.bf16.msra.mxu0 %v501_v49  ;;  %369 = vmatprep.mubr.f32.mxu0 %v583_v1 }
 0x1d0   :  { %504 = vmatprep.subr.bf16.mxu0 %v503_v51 }
 0x1d3   :  { %506 = vmatpush1.bf16.msra.mxu0 %v505_v54 }
 0x1d6   :  { %424 = vmatmul.mubr.msk.f32.vlgmr.msra.gmra.mrb[4].mxu0 %vm50_vm1, %v214_v50 }
 0x2a1   :  { %v300_v55 = vpop.f32.mrb[2].mxu0 }
 0x2a2   :  { %v425_v56 = vmul.f32 -1.442695, %v300_v55  ;;  %v302_v57 = vpop.f32.mrb[3].mxu0 }
 0x2a3   :  { %v426_v58 = vmul.f32 -1.442695, %v302_v57 }
 0x2a4   :  { %514 = vpow2.f32 %v425_v56 }
 0x2a5   :  { %516 = vpow2.f32 %v426_v58 }
 0x2a9   :  { %v371_v59 = vpop.f32.mrb[4].mxu0 }
 0x2aa   :  { %v427_v60 = vmul.f32 -1.442695, %v371_v59  ;;  %v373_v61 = vpop.f32.mrb[5].mxu0 }
 0x2ab   :  { %v428_v62 = vmul.f32 -1.442695, %v373_v61 }
 0x2ac   :  { %518 = vpow2.f32 %v427_v60 }
 0x2ad   :  { %520 = vpow2.f32 %v428_v62 }
 0x2ae   :  { %v515_v63 = vpop.eup %514 }
 0x2af   :  { %v517_v0 = vpop.eup %516  ;;  %v388_v2 = vadd.f32 1.0, %v515_v63 }
 0x2b0   :  { %v389_v1 = vadd.f32 1.0, %v517_v0 }
 0x2b1   :  { %522 = vrcp.f32 %v388_v2 }
 0x2b2   :  { %524 = vrcp.f32 %v389_v1 }
 0x2b6   :  { %v519_v3 = vpop.eup %518 }
 0x2b7   :  { %v521_v4 = vpop.eup %520  ;;  %v390_v5 = vadd.f32 1.0, %v519_v3 }
 0x2b8   :  { %v391_v6 = vadd.f32 1.0, %v521_v4 }
 0x2b9   :  { %526 = vrcp.f32 %v390_v5 }
 0x2ba   :  { %528 = vrcp.f32 %v391_v6 }
 0x2bb   :  { %v523_v7 = vpop.eup %522 }
 0x2bc   :  { %v525_v8 = vpop.eup %524  ;;  %400 = vst [vmem:[#allocation5] sm:$0xff] %v523_v7 }
 0x2bd   :  { %401 = vst [vmem:[#allocation5 + $0x8] sm:$0xff] %v525_v8 }
 0x2c3   :  { %v527_v9 = vpop.eup %526 }
 0x2c4   :  { %v529_v10 = vpop.eup %528  ;;  %402 = vst [vmem:[#allocation5 + $0x10] sm:$0xff] %v527_v9 }
 0x2c5   :  { %403 = vst [vmem:[#allocation5 + $0x18] sm:$0xff] %v529_v10 }
 0x2c6   :  { %563 = shalt.err (!%p560_p12)
}
 0x2c7   :  { %s564_s15 = scalar_lea.hbm %s702_s6, 512 }
 0x2c8   :  { %p565_p13 = scmp.ne.s32.totalorder %s702_s6, %s564_s15  ;;  %p568_p0 = scmp.lt.u32.totalorder %s564_s15, %s702_s6 }
 0x2ca   :  { %p570_p1 = pnand %p568_p0, %p565_p13 }
 0x2cc   :  { %573 = shalt.err (!%p570_p1)
}
 0x2cd   :  { %413 = dma.vmem_to_hbm [thread:$0]  %s411_s12, 512, %s702_s6, [#allocation4]  }
 0x2ce   :  { %576 = dma.done.wait [#allocation4], 512  }
 0x2cf   :  { %577 = vsyncadd [#allocation4], 4294966784 }
 0x2d0   :  { %417 = vsyncpa [#allocation3], 1 }
 0x2d1   :  { %418 = vsyncpa [#allocation4], 1 }

</bundles_post_ra>
